<compile_context>
chip_gen: v6e
topology: v6e:2x2x1
jax: 0.10.0
libtpu: 0.0.40
codegen_flags: <defaults>
</compile_context>

<pallas_src>
import functools
import math

import numpy as np
import jax
import jax.numpy as jnp
from jax import lax
from jax.experimental import pallas as pl
from jax.experimental.pallas import tpu as pltpu

KSIZE = 5
PAD = KSIZE // 2
N_FILT = 2

_LANE = 128
_SUBLANE = 8

# ~4 MiB of input per grid step (~12 MiB of HBM traffic) keeps the ~0.35us
# per-step overhead below ~10% of wall time at v7x's 3.2 TB/s HBM; on v6e/v5e
# steps are 2-4x longer so this already sits past the roofline knee.
_TARGET_IN_BYTES = 4 << 20
# Double-buffered (tile-padded) block budget per step + headroom for compiler
# temporaries.  28 + 8 MiB stays well under v7x's 64 MiB/TC VMEM and under
# v5e/v6e's 128 MiB physical VMEM.
_VMEM_BLOCK_BUDGET = 28 << 20
_VMEM_HEADROOM = 8 << 20


def init_grad_filters():
    """Deterministic filters from HQS.init_grad() — shape (2, 1, 5, 5)."""
    f = np.zeros((N_FILT, 1, KSIZE, KSIZE), np.float32)
    f[1, 0, 2, 2] = 1.0
    f[1, 0, 1, 2] = -1.0
    f[0, 0, 2, 2] = 1.0
    f[0, 0, 2, 1] = -1.0
    return jnp.asarray(f)


def hqs_beta():
    """beta buffer from HQS.__init__ (float32, shape (10,))."""
    beta = np.array([0, 4 ** 0, 4, 4 ** 2, 4 ** 3, 4 ** 4,
                     4 ** 5, 4 ** 6, 4 ** 7, 4 ** 8], dtype=np.float64)
    beta = beta * 0.001 / 10 * 81
    return jnp.asarray(beta, dtype=jnp.float32)


def _round_up(x, m):
    return ((x + m - 1) // m) * m


def _block_vmem_bytes(shape, itemsize=4):
    """Physical VMEM bytes of a block: last two dims pad to (8, 128) tiles."""
    rows = shape[-2] if len(shape) >= 2 else 1
    cols = shape[-1]
    lead = 1
    for d in shape[:-2]:
        lead *= int(d)
    return lead * _round_up(rows, _SUBLANE) * _round_up(cols, _LANE) * itemsize


def _grads(x, width):
    """init_grad() taps on a flattened (rows, k*W) block.

    Returns (horizontal, vertical) gradients with the zero-padded "same"
    boundary of F.conv2d(padding=2).  The vertical gradient of the first image
    row of the block is emitted as if zero-padded; callers that tile H*W patch
    block-boundary rows afterwards.
    """
    thw = x.shape[-1]
    # One (1, thw) mask row, broadcast into the selects (keeps the int32
    # iota/mod work off the full (nb, thw) block).
    idx = lax.broadcasted_iota(jnp.int32, (1, thw), 1)

    # Horizontal: x[h, w] - x[h, w-1], zero pad at w == 0.  The roll wraps the
    # block; wrapped values only land on masked (w == 0) positions because the
    # block starts on an image-row boundary.
    left = pltpu.roll(x, shift=1, axis=1)
    gh = x - jnp.where(idx % width == 0, 0.0, left)

    # Vertical: x[h, w] - x[h-1, w], zero pad at h == 0 (of this block).
    # NOTE: if W is not a multiple of 128 this roll needs cross-vreg lane
    # rotation; XLU has slack in this HBM-bound kernel, so it is left as-is.
    up = pltpu.roll(x, shift=width, axis=1)
    gv = x - jnp.where(idx < width, 0.0, up)
    return gh, gv


def _grad_kernel_batch(y_ref, o_ref, *, width, hw):
    """Batch-tiled path: y_ref (nb, HW) -> o_ref (nb, 2*HW), lane-dense."""
    gh, gv = _grads(y_ref[...], width)
    o_ref[:, :hw] = gh
    o_ref[:, hw:] = gv


def _grad_kernel_rows(y_ref, o_ref, *, width):
    """Row-tiled path: y_ref (nb, thw) -> o_ref (nb, 2, thw).

    Block-boundary rows of the vertical gradient are fixed up in the wrapper
    (their upper neighbour lives in the previous HW block).
    """
    gh, gv = _grads(y_ref[...], width)
    o_ref[:, 0, :] = gh
    o_ref[:, 1, :] = gv


def _pick_batch_block(N, row_bytes):
    """Batch block: multiple of 8 (full sublane tiles) or the full batch."""
    nb = max(1, min(N, _TARGET_IN_BYTES // max(row_bytes, 1)))
    if N >= 2 * _SUBLANE:
        nb = min(nb, N // 2)                 # >=2 steps so both v7x TCs get work
    if nb < N:
        nb = max(_SUBLANE, (nb // _SUBLANE) * _SUBLANE)
    nb = min(nb, N)
    # Best effort: keep the number of grid steps even so v7x's two TensorCores
    # stay balanced on the tail (neutral on single-core v5e/v6e).
    steps = pl.cdiv(N, nb)
    if steps > 1 and steps % 2:
        nb2 = (pl.cdiv(N, steps + 1) // _SUBLANE) * _SUBLANE
        if nb2 >= _SUBLANE and pl.cdiv(N, nb2) % 2 == 0:
            nb = nb2
    return nb


def grad_op(y, *, batch_block=None, hw_block=None):
    """HQS finite-difference operator: F.conv2d(y, init_grad(), padding=2).

    y: (N, 1, H, W) float32  ->  (N, 2, H, W) float32
    """
    N, C, H, W = y.shape
    assert C == 1, "init_grad filters have a single input channel"
    HW = H * W
    itemsize = jnp.dtype(y.dtype).itemsize
    y_flat = y.reshape(N, HW)                # layout plumbing only (free)

    # ---- batch block --------------------------------------------------------
    if batch_block is not None:
        assert batch_block == N or batch_block % _SUBLANE == 0, (
            "batch_block must be a multiple of 8 or equal to the batch size")
        nb = min(batch_block, N)
    else:
        nb = _pick_batch_block(N, HW * itemsize)

    batch_fp = 2 * (_block_vmem_bytes((nb, HW), itemsize)
                    + _block_vmem_bytes((nb, 2 * HW), itemsize))
    use_rows = (hw_block is not None) or (batch_fp > _VMEM_BLOCK_BUDGET)

    cost = pl.CostEstimate(flops=4 * N * HW,          # 2 subs + 2 selects / elem
                           transcendentals=0,
                           bytes_accessed=3 * N * HW * itemsize)

    if not use_rows:
        # Main path: tile over batch only; input (nb, HW) and output
        # (nb, 2*HW) blocks are fully dense (no sublane padding, unmasked vst).
        out_flat = pl.pallas_call(
            functools.partial(_grad_kernel_batch, width=W, hw=HW),
            out_shape=jax.ShapeDtypeStruct((N, 2 * HW), y.dtype),
            grid=(pl.cdiv(N, nb),),
            in_specs=[pl.BlockSpec((nb, HW), lambda n: (n, 0))],
            out_specs=pl.BlockSpec((nb, 2 * HW), lambda n: (n, 0)),
            compiler_params=pltpu.CompilerParams(
                dimension_semantics=("parallel",),
                vmem_limit_bytes=min(max(batch_fp + _VMEM_HEADROOM, 16 << 20),
                                     56 << 20)),
            cost_estimate=cost,
        )(y_flat)
        # Free reshape: (N, 2*HW) row-major == (N, 2, H, W) row-major.
        return out_flat.reshape(N, N_FILT, H, W)

    # ---- row-tiled path -----------------------------------------------------
    # A single image does not fit the per-step VMEM budget (or tiling was
    # forced): add a second grid axis over H*W in chunks that are a multiple of
    # W (so masks/rolls line up with image rows) and of 128 (lane-dense).
    if batch_block is None:
        nb = N if N <= _SUBLANE else _SUBLANE

    quant = math.lcm(W, _LANE)               # smallest legal HW chunk (elems)
    if hw_block is not None:
        thw = hw_block
        assert thw % W == 0 and (thw % _LANE == 0 or thw == HW), (
            "hw_block must be a multiple of W and of 128 (or equal to H*W)")
    else:
        def fp(t):
            return 2 * (_block_vmem_bytes((nb, t), itemsize)
                        + _block_vmem_bytes((nb, 2, t), itemsize))
        n_q = max(1, _VMEM_BLOCK_BUDGET // max(fp(quant), 1))
        thw = n_q * quant
        # TODO(synk): for pathological W (huge lcm(W, 128)) one quantum may
        # exceed the budget; we still emit it and only raise the VMEM limit.
    thw = min(thw, HW)

    row_fp = 2 * (_block_vmem_bytes((nb, thw), itemsize)
                  + _block_vmem_bytes((nb, 2, thw), itemsize))

    out = pl.pallas_call(
        functools.partial(_grad_kernel_rows, width=W),
        out_shape=jax.ShapeDtypeStruct((N, N_FILT, HW), y.dtype),
        grid=(pl.cdiv(N, nb), pl.cdiv(HW, thw)),
        in_specs=[pl.BlockSpec((nb, thw), lambda n, h: (n, h))],
        out_specs=pl.BlockSpec((nb, N_FILT, thw), lambda n, h: (n, 0, h)),
        compiler_params=pltpu.CompilerParams(
            dimension_semantics=("parallel", "parallel"),
            vmem_limit_bytes=min(max(row_fp + _VMEM_HEADROOM, 16 << 20),
                                 56 << 20)),
        cost_estimate=cost,
    )(y_flat)
    out = out.reshape(N, N_FILT, H, W)

    # Patch the vertical gradient of rows that start an HW block: the kernel
    # emitted x[r] (zero-padded); the true value is x[r] - x[r-1].  Touches
    # only N * (H / rows_per_block) * W elements, negligible HBM traffic.
    rows_per_block = thw // W
    boundary = np.arange(rows_per_block, H, rows_per_block)
    if boundary.size:
        out = out.at[:, 1, boundary, :].add(-y[:, 0, boundary - 1, :])
    return out


class HQSPallas:
    """JAX/Pallas counterpart of the PyTorch HQS module."""

    def __init__(self, n_iter=5, n_in=2):
        self.n_iter = n_iter
        self.n_in = n_in
        self.beta = hqs_beta()              # constant buffer (unused by forward)
        self.filters = init_grad_filters()  # init_grad() parameter, frozen

    def forward(self, y, kmag, kori, labels):
        # TODO(synk): reference HQS.forward raises NotImplementedError; we expose
        # the module's only concrete compute (init_grad gradient operator) on `y`.
        del kmag, kori, labels
        return grad_op(y)


if __name__ == "__main__":
    key = jax.random.PRNGKey(0)
    k1, k2, k3, k4 = jax.random.split(key, 4)

    model = HQSPallas(n_iter=5, n_in=2)

    def conv_ref(x):
        # Same cross-correlation semantics as PyTorch F.conv2d with padding=2.
        return lax.conv_general_dilated(
            x, model.filters, window_strides=(1, 1),
            padding=((PAD, PAD), (PAD, PAD)),
            dimension_numbers=("NCHW", "OIHW", "NCHW"))

    # 1) Small shape through the module-facing API (batch-tiled path).
    N, C, H, W = 2, 1, 16, 16
    y = jax.random.normal(k1, (N, C, H, W), dtype=jnp.float32)
    kmag = jax.random.normal(k2, (N, C, H, W), dtype=jnp.float32)
    kori = jax.random.normal(k3, (N, C, H, W), dtype=jnp.float32)
    labels = jnp.zeros((N,), dtype=jnp.int32)

    out = jax.block_until_ready(model.forward(y, kmag, kori, labels))
    ref = jax.block_until_ready(conv_ref(y))
    assert out.shape == (N, N_FILT, H, W)
    assert bool(jnp.allclose(out, ref, atol=1e-5, rtol=1e-5))

    # 2) Forced row-tiled path: ragged batch blocks, ragged HW blocks, and the
    #    block-boundary vertical-gradient fix-up.
    N2, H2, W2 = 12, 128, 128
    y2 = jax.random.normal(k4, (N2, 1, H2, W2), dtype=jnp.float32)
    out2 = jax.block_until_ready(grad_op(y2, hw_block=5 * W2))
    ref2 = jax.block_until_ready(conv_ref(y2))
    assert out2.shape == (N2, N_FILT, H2, W2)
    assert bool(jnp.allclose(out2, ref2, atol=1e-5, rtol=1e-5))

    print("KERNEL_OK")
</pallas_src>

<mosaic_0001>
module attributes {stable_mosaic.version = 11 : i64} {
  func.func @_grad_kernel_batch(%arg0: i32, %arg1: memref<2x256xf32, #tpu.memory_space<vmem>>, %arg2: memref<2x512xf32, #tpu.memory_space<vmem>>) attributes {dimension_semantics = [#tpu.dimension_semantics<parallel>], iteration_bounds = array<i64: 1>, scalar_prefetch = 0 : i64, scratch_operands = 0 : i64, tpu.core_type = #tpu.core_type<tc>, window_params = [{transform_indices = @transform_0, window_bounds = array<i64: 2, 256>}, {transform_indices = @transform_1, window_bounds = array<i64: 2, 512>}]} {
    %c0 = arith.constant 0 : index
    %c0_0 = arith.constant 0 : index
    %0 = vector.load %arg1[%c0, %c0_0] : memref<2x256xf32, #tpu.memory_space<vmem>>, vector<2x256xf32>
    %1 = tpu.iota {dimensions = array<i32: 1>} : vector<1x256xi32>
    %c1_i32 = arith.constant 1 : i32
    %2 = tpu.dynamic_rotate %0 by %c1_i32 dim 1 : vector<2x256xf32>, i32 -> vector<2x256xf32>
    %c16_i32 = arith.constant 16 : i32
    %c0_i32 = arith.constant 0 : i32
    %3 = arith.cmpi eq, %c16_i32, %c0_i32 : i32
    %c1_i32_1 = arith.constant 1 : i32
    %4 = arith.select %3, %c1_i32_1, %c16_i32 : i32
    %5 = vector.broadcast %4 : i32 to vector<1x256xi32>
    %6 = arith.remsi %1, %5 : vector<1x256xi32>
    %c0_i32_2 = arith.constant 0 : i32
    %7 = vector.broadcast %c0_i32_2 : i32 to vector<1x256xi32>
    %8 = arith.cmpi ne, %6, %7 : vector<1x256xi32>
    %c0_i32_3 = arith.constant 0 : i32
    %9 = vector.broadcast %c0_i32_3 : i32 to vector<1x256xi32>
    %10 = arith.cmpi slt, %6, %9 : vector<1x256xi32>
    %c0_i32_4 = arith.constant 0 : i32
    %11 = arith.cmpi slt, %4, %c0_i32_4 : i32
    %12 = vector.broadcast %11 : i1 to vector<1x256xi1>
    %13 = vector.broadcast %12 : vector<1x256xi1> to vector<1x256xi1>
    %14 = arith.xori %10, %13 : vector<1x256xi1>
    %15 = arith.andi %14, %8 : vector<1x256xi1>
    %16 = vector.broadcast %4 : i32 to vector<1x256xi32>
    %17 = arith.addi %6, %16 : vector<1x256xi32>
    %18 = arith.select %15, %17, %6 : vector<1x256xi1>, vector<1x256xi32>
    %c0_i32_5 = arith.constant 0 : i32
    %19 = vector.broadcast %c0_i32_5 : i32 to vector<1x256xi32>
    %20 = arith.cmpi eq, %18, %19 : vector<1x256xi32>
    %cst = arith.constant 0.000000e+00 : f32
    %21 = vector.shape_cast %20 : vector<1x256xi1> to vector<1x256xi1>
    %22 = vector.broadcast %21 : vector<1x256xi1> to vector<2x256xi1>
    %23 = vector.broadcast %cst : f32 to vector<2x256xf32>
    %24 = arith.select %22, %23, %2 : vector<2x256xi1>, vector<2x256xf32>
    %25 = arith.subf %0, %24 : vector<2x256xf32>
    %c16_i32_6 = arith.constant 16 : i32
    %26 = tpu.dynamic_rotate %0 by %c16_i32_6 dim 1 : vector<2x256xf32>, i32 -> vector<2x256xf32>
    %c16_i32_7 = arith.constant 16 : i32
    %27 = vector.broadcast %c16_i32_7 : i32 to vector<1x256xi32>
    %28 = arith.cmpi slt, %1, %27 : vector<1x256xi32>
    %cst_8 = arith.constant 0.000000e+00 : f32
    %29 = vector.shape_cast %28 : vector<1x256xi1> to vector<1x256xi1>
    %30 = vector.broadcast %29 : vector<1x256xi1> to vector<2x256xi1>
    %31 = vector.broadcast %cst_8 : f32 to vector<2x256xf32>
    %32 = arith.select %30, %31, %26 : vector<2x256xi1>, vector<2x256xf32>
    %33 = arith.subf %0, %32 : vector<2x256xf32>
    %c0_9 = arith.constant 0 : index
    %c0_10 = arith.constant 0 : index
    %34 = vector.load %arg2[%c0_9, %c0_10] : memref<2x512xf32, #tpu.memory_space<vmem>>, vector<2x256xf32>
    tpu.vector_store %arg2[%c0_9, %c0_10], %25 {strides = array<i32>} : memref<2x512xf32, #tpu.memory_space<vmem>>, vector<2x256xf32>,
    %c0_11 = arith.constant 0 : index
    %c256 = arith.constant 256 : index
    %35 = vector.load %arg2[%c0_11, %c256] : memref<2x512xf32, #tpu.memory_space<vmem>>, vector<2x256xf32>
    tpu.vector_store %arg2[%c0_11, %c256], %33 {strides = array<i32>} : memref<2x512xf32, #tpu.memory_space<vmem>>, vector<2x256xf32>,
    return
  }
  func.func @transform_0(%arg0: i32) -> (i32, i32) {
    %c0_i32 = arith.constant 0 : i32
    %c0_i32_0 = arith.constant 0 : i32
    return %arg0, %c0_i32 : i32, i32
  }
  func.func @transform_1(%arg0: i32) -> (i32, i32) {
    %c0_i32 = arith.constant 0 : i32
    %c0_i32_0 = arith.constant 0 : i32
    return %arg0, %c0_i32 : i32, i32
  }
}

</mosaic_0001>

<bundles_post_ra>
// kernel: tpu_custom_call.1
= control target key start
LH: loop header
LB: loop body
LE: loop exit
PB: predicated region body
PF: predicated region fallthrough
CT: control target
= control target key end

     0   :  { %6 = vsyncpa [#allocation3], 0  ;;  %s200_s0 = inlined_call_operand.hbm [shape: f32[2,256], index: 0, kind: input, shape index: {}]   ;;  %s201_s1 = inlined_call_operand.hbm [shape: f32[2,512], index: 1, kind: output, shape index: {}]  }
   0x1   :  { %7 = vsyncpa [#allocation4], 0  ;;  %s179_s6 = smov [#allocation2]  }
   0x2   :  { %s14_s7 = sshll.u32 %s179_s6, 4  ;;  %s15_s7 = int_to_ptr.vmem [resolvable:$true] %s14_s7 }
   0x3   :  { %s143_s8 = scalar_lea.vmem %s15_s7, 64  ;;  %p148_p1 = scmp.lt.s32.totalorder %s15_s7, %s15_s7 }
   0x4   :  { %p144_p0 = scmp.ne.s32.totalorder %s15_s7, %s143_s8  ;;  %p149_p2 = scmp.lt.s32.totalorder %s143_s8, %s143_s8 }
   0x6   :  { %p150_p3 = por %p149_p2, %p148_p1 }
   0x8   :  { %p151_p4 = pnand %p150_p3, %p144_p0 }
   0xa   :  { %154 = shalt.err (!%p151_p4)
}
   0xb   :  { %17 = dma.hbm_to_vmem [thread:$0]  %s200_s0, 64, %s15_s7, [#allocation3]  }
   0xc   :  { %175 = dma.done.wait [#allocation3], 64  }
   0xd   :  { %176 = vsyncadd [#allocation3], 4294967232  ;;  %v22_v0 = vlaneseq  ;;  %v180_v1 = vmov 1983009808   ;;  %v21_v6 = vld [vmem:[#allocation2] sm:$0xf] }
   0xe   :  { %v27_v2 = vunpack.c.l.s4 %v180_v1  ;;  %s181_s11 = smov 16   ;;  %s182_s12 = smov 1  }
   0xf   :  { %v30_v3 = vshrl.u32 %v22_v0, 7  ;;  %v23_v9 = vand.u32 127, %v22_v0  ;;  %s183_s0 = smov [#allocation5]  }
  0x10   :  { %v28_v4 = vunpack.c.0.s8 %v27_v2  ;;  %s121_s13 = sshll.u32 %s183_s0, 4  ;;  %s122_s13 = int_to_ptr.vmem [resolvable:$true] %s121_s13 }
  0x11   :  { %v24_v10 = vadd.s32 128, %v23_v9  ;;  %v47_v11 = vand.u32 15, %v23_v9  ;;  %vm91_vm0 = vcmp.lt.s32.totalorder %v23_v9, 16  ;;  %vm40_vm1 = vcmp.lt.s32.totalorder %v23_v9, 1  ;;  %s155_s14 = scalar_lea.vmem %s122_s13, 128  ;;  %p160_p6 = scmp.lt.s32.totalorder %s122_s13, %s122_s13 }
  0x12   :  { %v31_v5 = vsub.s32 %v28_v4, %v30_v3  ;;  %p156_p5 = scmp.ne.s32.totalorder %s122_s13, %s155_s14  ;;  %p161_p7 = scmp.lt.s32.totalorder %s155_s14, %s155_s14 }
  0x13   :  { %v54_v12 = vand.u32 15, %v24_v10  ;;  %vm67_vm2 = vcmp.eq.s32.totalorder %v47_v11, 0 }
  0x14   :  { %v32_v7 = vrot.slane %v21_v6, %v31_v5  ;;  %p162_p8 = por %p161_p7, %p160_p6 }
  0x15   :  { %vm68_vm3 = vcmp.eq.s32.totalorder %v54_v12, 0 }
  0x16   :  { %87 = vrot.lane.b32.xlu1 %v32_v7, %s181_s11  ;;  %36 = vrot.lane.b32.xlu0 %v32_v7, %s182_s12  ;;  %v33_v8 = vcombine.high %v32_v7, %v32_v7  ;;  %p163_p9 = pnand %p162_p8, %p156_p5 }
  0x1a   :  { %89 = vrot.lane.b32.xlu1 %v33_v8, %s181_s11  ;;  %38 = vrot.lane.b32.xlu0 %v33_v8, %s182_s12 }
  0x88   :  { %v88_v13 = vpop.permute.xlu1 %87  ;;  %v37_v14 = vpop.permute.xlu0 %36 }
  0x8c   :  { %v90_v15 = vpop.permute.xlu1 %89  ;;  %v39_v16 = vpop.permute.xlu0 %38 }
  0x8d   :  { %v92_v17 = vsel %vm91_vm0, %v88_v13, %v90_v15  ;;  %v93_v18 = vsel %vm91_vm0, %v90_v15, %v88_v13  ;;  %v41_v19 = vsel %vm40_vm1, %v37_v14, %v39_v16  ;;  %v42_v20 = vsel %vm40_vm1, %v39_v16, %v37_v14 }
  0x8e   :  { %v99_v21 = vsel %vm91_vm0, 0.0, %v93_v18  ;;  %v73_v22 = vsel %vm67_vm2, 0.0, %v42_v20  ;;  %v74_v23 = vsel %vm68_vm3, 0.0, %v41_v19 }
  0x8f   :  { %v103_v24 = vcombine.low %v99_v21, %v92_v17  ;;  %v77_v25 = vcombine.low %v73_v22, %v74_v23 }
  0x91   :  { %v110_v26 = vrot.slane %v103_v24, %v31_v5  ;;  %v84_v27 = vrot.slane %v77_v25, %v31_v5 }
  0x93   :  { %v86_v28 = vsub.f32 %v21_v6, %v84_v27  ;;  %v112_v29 = vsub.f32 %v21_v6, %v110_v26 }
  0x95   :  { %113 = vst [vmem:[#allocation5] sm:$0xf] %v86_v28  ;;  %114 = vst [vmem:[#allocation5 + $0x4] sm:$0xf] %v112_v29 }
  0x96   :  { %166 = shalt.err (!%p163_p9)
}
  0x97   :  { %124 = dma.vmem_to_hbm [thread:$0]  %s122_s13, 128, %s201_s1, [#allocation4]  }
  0x98   :  { %177 = dma.done.wait [#allocation4], 128  }
  0x99   :  { %178 = vsyncadd [#allocation4], 4294967168 }
  0x9a   :  { %128 = vsyncpa [#allocation3], 1 }
  0x9b   :  { %129 = vsyncpa [#allocation4], 1 }

</bundles_post_ra>
